<compile_context>
chip_gen: v6e
topology: v6e:2x2x1
jax: 0.10.0
libtpu: 0.0.40
codegen_flags: <defaults>
</compile_context>

<pallas_src>
import functools

import jax
import jax.numpy as jnp
from jax.experimental import pallas as pl
from jax.experimental.pallas import tpu as pltpu

_EPS = 1e-5
_LANE = 128
_VMEM_LIMIT = 48 * 1024 * 1024  # scoped limit safe on v7x (64 MiB physical)


def _round_up(n, m):
    return ((n + m - 1) // m) * m


# --------------------------------------------------------------------------
# Kernels
# --------------------------------------------------------------------------
def _fused_kernel(x_ref, w1_ref, g_ref, be_ref, w2_ref, b2_ref, o_ref,
                  *, inv_b, n_pad):
    """Whole-resident path: fc1 -> BN(train) -> ReLU -> fc2 -> sigmoid."""
    x = x_ref[...]                                             # [Bp, D]

    # fc1 (bias omitted -- cancels exactly under batch-stat BN).
    h = jnp.dot(x, w1_ref[...], preferred_element_type=jnp.float32)   # [Bp, Hp]

    # Batch statistics over the TRUE batch (padded rows are exact zeros; the
    # (h-mean)^2 contribution of a zero row is mean^2, subtracted below).
    mean = jnp.sum(h, axis=0, keepdims=True) * inv_b           # [1, Hp]
    hc = h - mean                                              # centered once
    var = (jnp.sum(hc * hc, axis=0, keepdims=True)
           - n_pad * mean * mean) * inv_b                      # [1, Hp]
    scale = g_ref[...] * jax.lax.rsqrt(var + _EPS)             # EUP rsqrt
    h = jnp.maximum(hc * scale + be_ref[...], 0.0)             # FMA + ReLU

    # fc2 + sigmoid (tanh form keeps the transcendental on the EUP slot).
    y = jnp.dot(h.astype(w2_ref.dtype), w2_ref[...],
                preferred_element_type=jnp.float32) + b2_ref[...]
    o_ref[...] = 0.5 * (jnp.tanh(0.5 * y) + 1.0)


def _stats_kernel(x_ref, w1_ref, h_ref, s_ref, ss_ref):
    """Tiled phase 1: fc1 on a B-tile + per-feature sum / sum-of-squares acc."""
    @pl.when(pl.program_id(0) == 0)
    def _():
        s_ref[...] = jnp.zeros_like(s_ref)
        ss_ref[...] = jnp.zeros_like(ss_ref)

    h = jnp.dot(x_ref[...], w1_ref[...], preferred_element_type=jnp.float32)
    h_ref[...] = h
    s_ref[...] += jnp.sum(h, axis=0, keepdims=True)
    ss_ref[...] += jnp.sum(h * h, axis=0, keepdims=True)


def _apply_kernel(h_ref, s_ref, ss_ref, g_ref, be_ref, w2_ref, b2_ref, o_ref,
                  *, inv_b):
    """Tiled phase 2: normalize + ReLU + fc2 + sigmoid on a B-tile."""
    mean = s_ref[...] * inv_b
    var = ss_ref[...] * inv_b - mean * mean
    scale = g_ref[...] * jax.lax.rsqrt(var + _EPS)
    shift = be_ref[...] - mean * scale
    h = jnp.maximum(h_ref[...] * scale + shift, 0.0)
    y = jnp.dot(h.astype(w2_ref.dtype), w2_ref[...],
                preferred_element_type=jnp.float32) + b2_ref[...]
    o_ref[...] = 0.5 * (jnp.tanh(0.5 * y) + 1.0)


# --------------------------------------------------------------------------
# One-time parameter prep (hoisted out of the per-call path)
# --------------------------------------------------------------------------
def prepare_params(params, *, matmul_dtype=jnp.float32, lane_multiple=_LANE):
    """Pad params to lane-dense widths and cast matmul operands ONCE.

    matmul_dtype=jnp.bfloat16 feeds the MXU in bf16 on v5e/v6e/v7x (halves
    weight/activation DMA, f32 accumulation via preferred_element_type); all
    BN/ReLU/sigmoid math stays f32.  Default f32 matches the reference tightly.
    """
    w1, gamma, beta = params["w1"], params["gamma"], params["beta"]
    w2, b2 = params["w2"], params["b2"]
    hid, out_dim = w1.shape[1], w2.shape[1]
    hid_p = _round_up(hid, lane_multiple)
    out_p = _round_up(out_dim, lane_multiple)

    # Exact zero padding: padded hidden columns stay identically zero through
    # BN/ReLU and hit zero rows of w2, so the sliced result is unchanged.
    w1p = jnp.pad(w1, ((0, 0), (0, hid_p - hid)))
    gp = jnp.pad(gamma, ((0, 0), (0, hid_p - hid)), constant_values=1.0)
    bp = jnp.pad(beta, ((0, 0), (0, hid_p - hid)))
    w2p = jnp.pad(w2, ((0, hid_p - hid), (0, out_p - out_dim)))
    b2p = jnp.pad(b2, ((0, 0), (0, out_p - out_dim)))

    if matmul_dtype != jnp.float32:
        w1p = w1p.astype(matmul_dtype)
        w2p = w2p.astype(matmul_dtype)

    return {"w1": w1p, "gamma": gp, "beta": bp, "w2": w2p, "b2": b2p,
            "out_dim": out_dim, "matmul_dtype": matmul_dtype}


# --------------------------------------------------------------------------
# Forward paths
# --------------------------------------------------------------------------
def _forward_resident(xp, p, b_true):
    bp_, d = xp.shape
    hid_p = p["w1"].shape[1]
    out_p = p["w2"].shape[1]
    kern = functools.partial(_fused_kernel,
                             inv_b=1.0 / b_true,
                             n_pad=float(bp_ - b_true))
    cost = pl.CostEstimate(
        flops=2 * bp_ * (d * hid_p + hid_p * out_p) + 6 * bp_ * hid_p,
        transcendentals=bp_ * out_p + hid_p,
        bytes_accessed=(xp.size * xp.dtype.itemsize
                        + p["w1"].size * p["w1"].dtype.itemsize
                        + p["w2"].size * p["w2"].dtype.itemsize
                        + 4 * (3 * hid_p + out_p)
                        + 4 * bp_ * out_p))
    vmem = pl.BlockSpec(memory_space=pltpu.MemorySpace.VMEM)
    return pl.pallas_call(
        kern,
        out_shape=jax.ShapeDtypeStruct((bp_, out_p), jnp.float32),
        in_specs=[vmem] * 6,
        out_specs=vmem,
        compiler_params=pltpu.CompilerParams(vmem_limit_bytes=_VMEM_LIMIT),
        cost_estimate=cost,
    )(xp, p["w1"], p["gamma"], p["beta"], p["w2"], p["b2"])


def _forward_tiled(xp, p, b_true, tb):
    bp_, d = xp.shape
    hid_p = p["w1"].shape[1]
    out_p = p["w2"].shape[1]
    n_tiles = bp_ // tb
    inv_b = 1.0 / b_true

    # ---- Phase 1: fc1 + stats accumulation (reduction axis -> "arbitrary").
    stats_cost = pl.CostEstimate(
        flops=2 * bp_ * d * hid_p + 3 * bp_ * hid_p,
        transcendentals=0,
        bytes_accessed=(xp.size * xp.dtype.itemsize
                        + p["w1"].size * p["w1"].dtype.itemsize
                        + 4 * bp_ * hid_p + 8 * hid_p))
    h, s, ss = pl.pallas_call(
        _stats_kernel,
        out_shape=(jax.ShapeDtypeStruct((bp_, hid_p), jnp.float32),
                   jax.ShapeDtypeStruct((1, hid_p), jnp.float32),
                   jax.ShapeDtypeStruct((1, hid_p), jnp.float32)),
        grid=(n_tiles,),
        in_specs=[pl.BlockSpec((tb, d), lambda i: (i, 0)),
                  pl.BlockSpec((d, hid_p), lambda i: (0, 0))],
        out_specs=(pl.BlockSpec((tb, hid_p), lambda i: (i, 0)),
                   pl.BlockSpec((1, hid_p), lambda i: (0, 0)),
                   pl.BlockSpec((1, hid_p), lambda i: (0, 0))),
        compiler_params=pltpu.CompilerParams(
            dimension_semantics=("arbitrary",),
            vmem_limit_bytes=_VMEM_LIMIT),
        cost_estimate=stats_cost,
    )(xp, p["w1"])

    # ---- Phase 2: normalize + ReLU + fc2 + sigmoid ("parallel" -> 2 TCs on v7x).
    kern = functools.partial(_apply_kernel, inv_b=inv_b)
    apply_cost = pl.CostEstimate(
        flops=2 * bp_ * hid_p * out_p + 4 * bp_ * hid_p,
        transcendentals=bp_ * out_p + hid_p,
        bytes_accessed=(4 * bp_ * hid_p
                        + p["w2"].size * p["w2"].dtype.itemsize
                        + 4 * (4 * hid_p + out_p)
                        + 4 * bp_ * out_p))
    return pl.pallas_call(
        kern,
        out_shape=jax.ShapeDtypeStruct((bp_, out_p), jnp.float32),
        grid=(n_tiles,),
        in_specs=[pl.BlockSpec((tb, hid_p), lambda i: (i, 0)),
                  pl.BlockSpec((1, hid_p), lambda i: (0, 0)),
                  pl.BlockSpec((1, hid_p), lambda i: (0, 0)),
                  pl.BlockSpec((1, hid_p), lambda i: (0, 0)),
                  pl.BlockSpec((1, hid_p), lambda i: (0, 0)),
                  pl.BlockSpec((hid_p, out_p), lambda i: (0, 0)),
                  pl.BlockSpec((1, out_p), lambda i: (0, 0))],
        out_specs=pl.BlockSpec((tb, out_p), lambda i: (i, 0)),
        compiler_params=pltpu.CompilerParams(
            dimension_semantics=("parallel",),
            vmem_limit_bytes=_VMEM_LIMIT),
        cost_estimate=apply_cost,
    )(h, s, ss, p["gamma"], p["beta"], p["w2"], p["b2"])


def classifier_forward(x, prepared, *, b_tile=512):
    """x: [B, input_dim] f32.  prepared: output of prepare_params (pre-padded).

    Small batches (B_padded <= b_tile) use the whole-resident fused kernel;
    larger batches use the two-phase B-tiled grid (tile = b_tile rows).
    """
    if x.shape[0] < 2:
        raise ValueError("BatchNorm1d training-mode statistics need batch >= 2")

    dt = prepared["matmul_dtype"]
    sub = 16 if dt == jnp.bfloat16 else 8   # sublane multiple for the batch dim
    b, _ = x.shape
    out_dim = prepared["out_dim"]

    if dt != jnp.float32:
        x = x.astype(dt)

    if _round_up(b, sub) <= max(b_tile, sub):
        bp_ = _round_up(b, sub)
        xp = x if bp_ == b else jnp.pad(x, ((0, bp_ - b), (0, 0)))
        out = _forward_resident(xp, prepared, b)
    else:
        tb = _round_up(b_tile, sub)
        bp_ = _round_up(b, tb)
        xp = x if bp_ == b else jnp.pad(x, ((0, bp_ - b), (0, 0)))
        out = _forward_tiled(xp, prepared, b, tb)

    return out[:b, :out_dim]


# --------------------------------------------------------------------------
# Parameter init + pure-JAX reference
# --------------------------------------------------------------------------
def init_params(key, input_dim, hid_dim, output_dim):
    """Deterministic synthetic parameters (PyTorch-like uniform init)."""
    k1, k2, k3, k4 = jax.random.split(key, 4)
    lim1 = 1.0 / jnp.sqrt(input_dim)
    lim2 = 1.0 / jnp.sqrt(hid_dim)
    # nn.Linear stores weight as [out, in]; pre-transpose to [in, out].
    w1 = jax.random.uniform(k1, (hid_dim, input_dim), jnp.float32, -lim1, lim1).T
    b1 = jax.random.uniform(k2, (1, hid_dim), jnp.float32, -lim1, lim1)
    w2 = jax.random.uniform(k3, (output_dim, hid_dim), jnp.float32, -lim2, lim2).T
    b2 = jax.random.uniform(k4, (1, output_dim), jnp.float32, -lim2, lim2)
    gamma = jnp.ones((1, hid_dim), jnp.float32)    # BatchNorm1d default weight
    beta = jnp.zeros((1, hid_dim), jnp.float32)    # BatchNorm1d default bias
    return {"w1": w1, "b1": b1, "gamma": gamma, "beta": beta, "w2": w2, "b2": b2}


def _reference(x, p):
    # Full PyTorch-equivalent math, *including* the fc1 bias (the kernel omits
    # it via exact cancellation under batch-stat BN; this verifies that claim).
    h = x @ p["w1"] + p["b1"]
    mean = jnp.mean(h, axis=0, keepdims=True)
    var = jnp.mean((h - mean) ** 2, axis=0, keepdims=True)
    h = (h - mean) / jnp.sqrt(var + _EPS) * p["gamma"] + p["beta"]
    h = jnp.maximum(h, 0.0)
    y = h @ p["w2"] + p["b2"]
    return jax.nn.sigmoid(y)


if __name__ == "__main__":
    INPUT_DIM, HID_DIM, OUTPUT_DIM = 16, 32, 4

    key = jax.random.PRNGKey(0)
    kx1, kx2, kp = jax.random.split(key, 3)
    params = init_params(kp, INPUT_DIM, HID_DIM, OUTPUT_DIM)
    prepared = prepare_params(params)            # one-time pad/cast (hoisted)

    # --- Path 1: whole-resident fused kernel (small batch) ---
    B1 = 8
    x1 = jax.random.normal(kx1, (B1, INPUT_DIM), jnp.float32)
    out1 = jax.block_until_ready(classifier_forward(x1, prepared))
    ref1 = _reference(x1, params)
    assert out1.shape == (B1, OUTPUT_DIM), out1.shape
    assert jnp.allclose(out1, ref1, atol=2e-5, rtol=1e-5), (
        "resident path mismatch, max abs err = %e"
        % float(jnp.max(jnp.abs(out1 - ref1))))

    # --- Path 2: B-tiled two-phase grid (forced via small b_tile) ---
    B2 = 48
    x2 = jax.random.normal(kx2, (B2, INPUT_DIM), jnp.float32)
    out2 = jax.block_until_ready(classifier_forward(x2, prepared, b_tile=16))
    ref2 = _reference(x2, params)
    assert out2.shape == (B2, OUTPUT_DIM), out2.shape
    assert jnp.allclose(out2, ref2, atol=2e-5, rtol=1e-5), (
        "tiled path mismatch, max abs err = %e"
        % float(jnp.max(jnp.abs(out2 - ref2))))

    print("KERNEL_OK")
</pallas_src>

<mosaic_0001>
module attributes {stable_mosaic.version = 11 : i64} {
  func.func @_fused_kernel(%arg0: memref<8x16xf32, #tpu.memory_space<vmem>>, %arg1: memref<16x128xf32, #tpu.memory_space<vmem>>, %arg2: memref<1x128xf32, #tpu.memory_space<vmem>>, %arg3: memref<1x128xf32, #tpu.memory_space<vmem>>, %arg4: memref<128x128xf32, #tpu.memory_space<vmem>>, %arg5: memref<1x128xf32, #tpu.memory_space<vmem>>, %arg6: memref<8x128xf32, #tpu.memory_space<vmem>>) attributes {dimension_semantics = [], scalar_prefetch = 0 : i64, scratch_operands = 0 : i64, tpu.core_type = #tpu.core_type<tc>} {
    %c0 = arith.constant 0 : index
    %c0_0 = arith.constant 0 : index
    %0 = vector.load %arg0[%c0, %c0_0] : memref<8x16xf32, #tpu.memory_space<vmem>>, vector<8x16xf32>
    %c0_1 = arith.constant 0 : index
    %c0_2 = arith.constant 0 : index
    %1 = vector.load %arg1[%c0_1, %c0_2] : memref<16x128xf32, #tpu.memory_space<vmem>>, vector<16x128xf32>
    %cst = arith.constant dense<0.000000e+00> : vector<8x128xf32>
    %2 = tpu.matmul %0, %1, %cst {dimension_numbers = #tpu.dot_dimension_numbers<[1], [0], [0], [1], [0, 0, 1, 1], [], []>} : vector<8x16xf32>, vector<16x128xf32>, vector<8x128xf32> -> vector<8x128xf32>
    %cst_3 = arith.constant dense<0.000000e+00> : vector<128xf32>
    %3 = vector.multi_reduction <add>, %2, %cst_3 [0] : vector<8x128xf32> to vector<128xf32>
    %4 = vector.shape_cast %3 : vector<128xf32> to vector<1x128xf32>
    %cst_4 = arith.constant 1.250000e-01 : f32
    %5 = vector.broadcast %cst_4 : f32 to vector<1x128xf32>
    %6 = arith.mulf %4, %5 : vector<1x128xf32>
    %7 = vector.broadcast %6 : vector<1x128xf32> to vector<8x128xf32>
    %8 = arith.subf %2, %7 : vector<8x128xf32>
    %9 = arith.mulf %8, %8 : vector<8x128xf32>
    %cst_5 = arith.constant dense<0.000000e+00> : vector<128xf32>
    %10 = vector.multi_reduction <add>, %9, %cst_5 [0] : vector<8x128xf32> to vector<128xf32>
    %11 = vector.shape_cast %10 : vector<128xf32> to vector<1x128xf32>
    %cst_6 = arith.constant 0.000000e+00 : f32
    %12 = vector.broadcast %cst_6 : f32 to vector<1x128xf32>
    %13 = arith.mulf %12, %6 : vector<1x128xf32>
    %14 = arith.mulf %13, %6 : vector<1x128xf32>
    %15 = arith.subf %11, %14 : vector<1x128xf32>
    %cst_7 = arith.constant 1.250000e-01 : f32
    %16 = vector.broadcast %cst_7 : f32 to vector<1x128xf32>
    %17 = arith.mulf %15, %16 : vector<1x128xf32>
    %c0_8 = arith.constant 0 : index
    %c0_9 = arith.constant 0 : index
    %18 = vector.load %arg2[%c0_8, %c0_9] : memref<1x128xf32, #tpu.memory_space<vmem>>, vector<1x128xf32>
    %cst_10 = arith.constant 9.99999974E-6 : f32
    %19 = vector.broadcast %cst_10 : f32 to vector<1x128xf32>
    %20 = arith.addf %17, %19 : vector<1x128xf32>
    %21 = math.rsqrt %20 : vector<1x128xf32>
    %22 = arith.mulf %18, %21 : vector<1x128xf32>
    %23 = vector.broadcast %22 : vector<1x128xf32> to vector<8x128xf32>
    %24 = arith.mulf %8, %23 : vector<8x128xf32>
    %c0_11 = arith.constant 0 : index
    %c0_12 = arith.constant 0 : index
    %25 = vector.load %arg3[%c0_11, %c0_12] : memref<1x128xf32, #tpu.memory_space<vmem>>, vector<1x128xf32>
    %26 = vector.broadcast %25 : vector<1x128xf32> to vector<8x128xf32>
    %27 = arith.addf %24, %26 : vector<8x128xf32>
    %cst_13 = arith.constant 0.000000e+00 : f32
    %28 = vector.broadcast %cst_13 : f32 to vector<8x128xf32>
    %29 = arith.maximumf %27, %28 : vector<8x128xf32>
    %c0_14 = arith.constant 0 : index
    %c0_15 = arith.constant 0 : index
    %30 = vector.load %arg4[%c0_14, %c0_15] : memref<128x128xf32, #tpu.memory_space<vmem>>, vector<128x128xf32>
    %cst_16 = arith.constant dense<0.000000e+00> : vector<8x128xf32>
    %31 = tpu.matmul %29, %30, %cst_16 {dimension_numbers = #tpu.dot_dimension_numbers<[1], [0], [0], [1], [0, 0, 1, 1], [], []>} : vector<8x128xf32>, vector<128x128xf32>, vector<8x128xf32> -> vector<8x128xf32>
    %c0_17 = arith.constant 0 : index
    %c0_18 = arith.constant 0 : index
    %32 = vector.load %arg5[%c0_17, %c0_18] : memref<1x128xf32, #tpu.memory_space<vmem>>, vector<1x128xf32>
    %33 = vector.broadcast %32 : vector<1x128xf32> to vector<8x128xf32>
    %34 = arith.addf %31, %33 : vector<8x128xf32>
    %cst_19 = arith.constant 5.000000e-01 : f32
    %35 = vector.broadcast %cst_19 : f32 to vector<8x128xf32>
    %36 = arith.mulf %35, %34 : vector<8x128xf32>
    %37 = math.tanh %36 : vector<8x128xf32>
    %cst_20 = arith.constant 1.000000e+00 : f32
    %38 = vector.broadcast %cst_20 : f32 to vector<8x128xf32>
    %39 = arith.addf %37, %38 : vector<8x128xf32>
    %cst_21 = arith.constant 5.000000e-01 : f32
    %40 = vector.broadcast %cst_21 : f32 to vector<8x128xf32>
    %41 = arith.mulf %40, %39 : vector<8x128xf32>
    %c0_22 = arith.constant 0 : index
    %c0_23 = arith.constant 0 : index
    %42 = vector.load %arg6[%c0_22, %c0_23] : memref<8x128xf32, #tpu.memory_space<vmem>>, vector<8x128xf32>
    tpu.vector_store %arg6[%c0_22, %c0_23], %41 {strides = array<i32>} : memref<8x128xf32, #tpu.memory_space<vmem>>, vector<8x128xf32>,
    return
  }
}

</mosaic_0001>

<bundles_post_ra>
// kernel: tpu_custom_call.1
= control target key start
LH: loop header
LB: loop body
LE: loop exit
PB: predicated region body
PF: predicated region fallthrough
CT: control target
= control target key end

     0   :  { %11 = vsyncpa [#allocation3], 0  ;;  %s520_s0 = inlined_call_operand.hbm [shape: f32[8,16], index: 0, kind: input, shape index: {}]   ;;  %s521_s1 = inlined_call_operand.hbm [shape: f32[16,128], index: 1, kind: input, shape index: {}]   ;;  %s522_s2 = inlined_call_operand.vmem [shape: f32[1,128], index: 2, kind: input, shape index: {}]   ;;  %s523_s3 = inlined_call_operand.vmem [shape: f32[1,128], index: 3, kind: input, shape index: {}]   ;;  %s524_s4 = inlined_call_operand.hbm [shape: f32[128,128], index: 4, kind: input, shape index: {}]   ;;  %s525_s5 = inlined_call_operand.vmem [shape: f32[1,128], index: 5, kind: input, shape index: {}]   ;;  %s526_s6 = inlined_call_operand.hbm [shape: f32[8,128], index: 6, kind: output, shape index: {}]  }
   0x1   :  { %12 = vsyncpa [#allocation6], 0 }
   0x2   :  { %13 = vsyncpa [#allocation4], 0  ;;  %s456_s21 = smov [#allocation5]  }
   0x3   :  { %s29_s22 = sshll.u32 %s456_s21, 4  ;;  %s30_s22 = int_to_ptr.vmem [resolvable:$true] %s29_s22 }
   0x4   :  { %s378_s23 = scalar_lea.vmem %s30_s22, 256  ;;  %p383_p1 = scmp.lt.s32.totalorder %s30_s22, %s30_s22 }
   0x5   :  { %p379_p0 = scmp.ne.s32.totalorder %s30_s22, %s378_s23  ;;  %p384_p2 = scmp.lt.s32.totalorder %s378_s23, %s378_s23 }
   0x7   :  { %p385_p3 = por %p384_p2, %p383_p1 }
   0x9   :  { %p386_p4 = pnand %p385_p3, %p379_p0 }
   0xb   :  { %389 = shalt.err (!%p386_p4)
}
   0xc   :  { %s457_s24 = smov 128   ;;  %s458_s25 = smov 8  }
   0xd   :  { %35 = dma.hbm_to_vmem [thread:$0]  %s521_s1, 256, %s30_s22, [#allocation6], %s457_s24, %s457_s24, %s458_s25  }
   0xe   :  { %s459_s28 = smov [#allocation2]   ;;  %s460_s30 = smov [#allocation7]  }
   0xf   :  { %s20_s29 = sshll.u32 %s459_s28, 4  ;;  %s45_s7 = sshll.u32 %s460_s30, 4  ;;  %s21_s29 = int_to_ptr.vmem [resolvable:$true] %s20_s29  ;;  %s46_s7 = int_to_ptr.vmem [resolvable:$true] %s45_s7 }
  0x10   :  { %s398_s8 = scalar_lea.vmem %s21_s29, 128  ;;  %p403_p6 = scmp.lt.s32.totalorder %s21_s29, %s21_s29 }
  0x11   :  { %p399_p5 = scmp.ne.s32.totalorder %s21_s29, %s398_s8  ;;  %p404_p7 = scmp.lt.s32.totalorder %s398_s8, %s398_s8 }
  0x13   :  { %p405_p8 = por %p404_p7, %p403_p6 }
  0x15   :  { %p406_p9 = pnand %p405_p8, %p399_p5 }
  0x17   :  { %409 = shalt.err (!%p406_p9)
}
  0x18   :  { %23 = dma.hbm_to_vmem [thread:$0]  %s520_s0, 128, %s21_s29, [#allocation3]  }
  0x19   :  { %s418_s11 = scalar_lea.vmem %s46_s7, 2048  ;;  %p423_p11 = scmp.lt.s32.totalorder %s46_s7, %s46_s7 }
  0x1a   :  { %p419_p10 = scmp.ne.s32.totalorder %s46_s7, %s418_s11  ;;  %p424_p12 = scmp.lt.s32.totalorder %s418_s11, %s418_s11 }
  0x1c   :  { %p425_p13 = por %p424_p12, %p423_p11 }
  0x1e   :  { %p426_p0 = pnand %p425_p13, %p419_p10 }
  0x20   :  { %429 = shalt.err (!%p426_p0)
}
  0x21   :  { %51 = dma.hbm_to_vmem [thread:$0]  %s524_s4, 2048, %s46_s7, [#allocation6], %s457_s24, %s457_s24, %s458_s25  }
  0x22   :  { %450 = dma.done.wait [#allocation3], 128  }
  0x23   :  { %451 = vsyncadd [#allocation3], 4294967168 }
  0x24   :  { %452 = dma.done.wait [#allocation6], 2304  }
  0x25   :  { %453 = vsyncadd [#allocation6], 4294964992  ;;  %v461_v0 = vmov 0.0   ;;  %vm462_vm0 = vmmov 0   ;;  %v65_v1 = vld [vmem:[#allocation5 + $0x8] sm:$0xff]  ;;  %v64_v2 = vld [vmem:[#allocation5] sm:$0xff]  ;;  %v164_v42 = vlaneseq }
  0x26   :  { %316 = vmatprep.subr.mxu0 %v461_v0  ;;  %320 = vmatprep.mubr.msk.f32.mxu0 %vm462_vm0, %v461_v0  ;;  %v63_v3 = vld [vmem:[#allocation2] sm:$0xff]  ;;  %vm66_vm1 = vcmask 130048   ;;  %v194_v4 = vld [vmem:[#allocation7 + $0x78] sm:$0xff]  ;;  %v193_v5 = vld [vmem:[#allocation7 + $0x70] sm:$0xff] }
  0x27   :  { %323 = vmatprep.subr.mxu1 %v461_v0  ;;  %355 = vmatprep.mubr.msk.f32.mxu1 %vm462_vm0, %v461_v0  ;;  %v192_v6 = vld [vmem:[#allocation7 + $0x68] sm:$0xff]  ;;  %v191_v7 = vld [vmem:[#allocation7 + $0x60] sm:$0xff]  ;;  %v190_v8 = vld [vmem:[#allocation7 + $0x58] sm:$0xff]  ;;  %v165_v43 = vshrl.u32 %v164_v42, 7 }
  0x28   :  { %317 = vmatpush3.msra.mxu0 %v65_v1  ;;  %324 = vmatpush3.msra.mxu1 %v194_v4  ;;  %v189_v9 = vld [vmem:[#allocation7 + $0x50] sm:$0xff]  ;;  %v188_v10 = vld [vmem:[#allocation7 + $0x48] sm:$0xff]  ;;  %v187_v11 = vld [vmem:[#allocation7 + $0x40] sm:$0xff] }
  0x29   :  { %318 = vmatprep.subr.mxu0 %v461_v0  ;;  %325 = vmatprep.subr.mxu1 %v461_v0  ;;  %v186_v12 = vld [vmem:[#allocation7 + $0x38] sm:$0xff]  ;;  %v185_v13 = vld [vmem:[#allocation7 + $0x30] sm:$0xff]  ;;  %v184_v14 = vld [vmem:[#allocation7 + $0x28] sm:$0xff]  ;;  %v166_v45 = vsub.s32 0, %v165_v43 }
  0x2a   :  { %319 = vmatpush3.msra.mxu0 %v64_v2  ;;  %326 = vmatpush3.msra.mxu1 %v193_v5  ;;  %v183_v15 = vld [vmem:[#allocation7 + $0x20] sm:$0xff]  ;;  %v182_v16 = vld [vmem:[#allocation7 + $0x18] sm:$0xff]  ;;  %v181_v17 = vld [vmem:[#allocation7 + $0x10] sm:$0xff] }
  0x2b   :  { %321 = vmatmul.mubr.msk.f32.vlgmr.msra.gmra.mxu0 %vm66_vm1, %v63_v3  ;;  %327 = vmatprep.subr.mxu1 %v461_v0  ;;  %v180_v18 = vld [vmem:[#allocation7 + $0x8] sm:$0xff]  ;;  %v179_v19 = vld [vmem:[#allocation7] sm:$0xff] }
  0x2c   :  { %328 = vmatpush3.msra.mxu1 %v192_v6  ;;  %v159_v44 = vld [vmem:[%s522_s2] sm:$0x1]  ;;  %s463_s2 = smov [#allocation8]  }
  0x2d   :  { %329 = vmatprep.subr.mxu1 %v461_v0  ;;  %v294_v49 = vld [vmem:[%s523_s3] ss:$0 sm:$0xff]  ;;  %s283_s17 = sshll.u32 %s463_s2, 4  ;;  %s284_s17 = int_to_ptr.vmem [resolvable:$true] %s283_s17 }
  0x2e   :  { %330 = vmatpush3.msra.mxu1 %v191_v7  ;;  %v295_v53 = vld [vmem:[%s525_s5] ss:$0 sm:$0xff]  ;;  %s430_s3 = scalar_lea.vmem %s284_s17, 128  ;;  %p435_p2 = scmp.lt.s32.totalorder %s284_s17, %s284_s17 }
  0x2f   :  { %331 = vmatprep.subr.mxu1 %v461_v0  ;;  %p431_p1 = scmp.ne.s32.totalorder %s284_s17, %s430_s3  ;;  %p436_p3 = scmp.lt.s32.totalorder %s430_s3, %s430_s3 }
  0x30   :  { %332 = vmatpush3.msra.mxu1 %v190_v8 }
  0x31   :  { %333 = vmatprep.subr.mxu1 %v461_v0  ;;  %p437_p4 = por %p436_p3, %p435_p2 }
  0x32   :  { %334 = vmatpush3.msra.mxu1 %v189_v9 }
  0x33   :  { %335 = vmatprep.subr.mxu1 %v461_v0  ;;  %p438_p5 = pnand %p437_p4, %p431_p1 }
  0x34   :  { %336 = vmatpush3.msra.mxu1 %v188_v10 }
  0x35   :  { %337 = vmatprep.subr.mxu1 %v461_v0 }
  0x36   :  { %338 = vmatpush3.msra.mxu1 %v187_v11 }
  0x37   :  { %339 = vmatprep.subr.mxu1 %v461_v0 }
  0x38   :  { %340 = vmatpush3.msra.mxu1 %v186_v12 }
  0x39   :  { %341 = vmatprep.subr.mxu1 %v461_v0 }
  0x3a   :  { %342 = vmatpush3.msra.mxu1 %v185_v13 }
  0x3b   :  { %343 = vmatprep.subr.mxu1 %v461_v0 }
  0x3c   :  { %344 = vmatpush3.msra.mxu1 %v184_v14 }
  0x3d   :  { %345 = vmatprep.subr.mxu1 %v461_v0 }
  0x3e   :  { %346 = vmatpush3.msra.mxu1 %v183_v15 }
  0x3f   :  { %347 = vmatprep.subr.mxu1 %v461_v0 }
  0x40   :  { %348 = vmatpush3.msra.mxu1 %v182_v16 }
  0x41   :  { %349 = vmatprep.subr.mxu1 %v461_v0 }
  0x42   :  { %350 = vmatpush3.msra.mxu1 %v181_v17 }
  0x43   :  { %351 = vmatprep.subr.mxu1 %v461_v0 }
  0x44   :  { %352 = vmatpush3.msra.mxu1 %v180_v18 }
  0x45   :  { %353 = vmatprep.subr.mxu1 %v461_v0 }
  0x46   :  { %354 = vmatpush3.msra.mxu1 %v179_v19 }
  0xeb   :  { %v136_v20 = vpop.f32.mrf.mxu0 }
  0xec   :  { %v140_v21 = vrot.slane %v136_v20, 4 }
  0xed   :  { %v322_v22 = vpop.f32.mrf.mxu0 }
  0xee   :  { %v141_v23 = vadd.f32 %v140_v21, %v136_v20 }
  0xf0   :  { %v142_v24 = vrot.slane %v141_v23, 2 }
  0xf2   :  { %v143_v25 = vadd.f32 %v142_v24, %v141_v23 }
  0xf4   :  { %v144_v26 = vrot.slane %v143_v25, 1 }
  0xf6   :  { %v145_v27 = vadd.f32 %v144_v26, %v143_v25 }
  0xf8   :  { %v146_v28 = vmul.f32 0.125, %v145_v27 }
  0xfa   :  { %v147_v29 = vsub.f32 %v136_v20, %v146_v28  ;;  %v155_v35 = vmul.f32 0.0, %v146_v28 }
  0xfc   :  { %v148_v30 = vmul.f32 %v147_v29, %v147_v29  ;;  %v156_v38 = vmul.f32 %v155_v35, %v146_v28 }
  0xfe   :  { %v149_v31 = vrot.slane %v148_v30, 4 }
 0x100   :  { %v150_v32 = vadd.f32 %v149_v31, %v148_v30 }
 0x102   :  { %v151_v33 = vrot.slane %v150_v32, 2 }
 0x104   :  { %v152_v34 = vadd.f32 %v151_v33, %v150_v32 }
 0x106   :  { %v153_v36 = vrot.slane %v152_v34, 1 }
 0x108   :  { %v154_v37 = vadd.f32 %v153_v36, %v152_v34 }
 0x10a   :  { %v157_v39 = vsub.f32 %v154_v37, %v156_v38 }
 0x10c   :  { %v158_v40 = vmul.f32 0.125, %v157_v39 }
 0x10e   :  { %v160_v41 = vadd.f32 1e-05, %v158_v40 }
 0x110   :  { %366 = vrsqrt.f32 %v160_v41 }
 0x11d   :  { %v367_v46 = vpop.eup %366 }
 0x11e   :  { %v162_v47 = vmul.f32 %v367_v46, %v159_v44 }
 0x120   :  { %v167_v48 = vrot.slane %v162_v47, %v166_v45 }
 0x122   :  { %v169_v50 = vmul.f32 %v167_v48, %v147_v29 }
 0x124   :  { %v177_v51 = vadd.f32 %v294_v49, %v169_v50 }
 0x126   :  { %v178_v52 = vmax.f32 %v177_v51, 0.0 }
 0x128   :  { %356 = vmatmul.mubr.f32.vlgmr.msra.gmra.mxu1 %v178_v52 }
 0x1e8   :  { %v268_v54 = vpop.f32.mrf.mxu1 }
 0x1e9   :  { %v269_v55 = vadd.f32 %v295_v53, %v268_v54 }
 0x1ea   :  { %v357_v56 = vpop.f32.mrf.mxu1 }
 0x1eb   :  { %v272_v57 = vmul.f32 0.5, %v269_v55 }
 0x1ed   :  { %368 = vtanh.f32 %v272_v57 }
 0x1fa   :  { %v369_v58 = vpop.eup %368 }
 0x1fb   :  { %v274_v59 = vadd.f32 1.0, %v369_v58 }
 0x1fd   :  { %v275_v60 = vmul.f32 0.5, %v274_v59 }
 0x1ff   :  { %276 = vst [vmem:[#allocation8] sm:$0xff] %v275_v60 }
 0x200   :  { %441 = shalt.err (!%p438_p5)
}
 0x201   :  { %286 = dma.vmem_to_hbm [thread:$0]  %s284_s17, 128, %s526_s6, [#allocation4]  }
 0x202   :  { %454 = dma.done.wait [#allocation4], 128  }
 0x203   :  { %455 = vsyncadd [#allocation4], 4294967168 }
 0x204   :  { %290 = vsyncpa [#allocation3], 1 }
 0x205   :  { %291 = vsyncpa [#allocation6], 1 }
 0x206   :  { %292 = vsyncpa [#allocation4], 1 }

</bundles_post_ra>
